<compile_context>
chip_gen: v7x
topology: tpu7x:2x2x1
jax: 0.10.0
libtpu: 0.0.40
codegen_flags: <defaults>
</compile_context>

<pallas_src>
import functools
import math

import jax
import jax.numpy as jnp
import numpy as np
from jax.experimental import pallas as pl
from jax.experimental.pallas import tpu as pltpu


def _harmonic_kernel(w_ref, x_ref, o_ref, *, c, h, include_input):
    """One grid step.

    w_ref: (C*H, C) f32   frequency/placement matrix (kernel input, not a
                          captured constant)
    x_ref: (C, TILE_N)    lane-dense input points (points on the lane axis)
    o_ref: (OUT_DIM, TILE_N), OUT_DIM = 2*C*H (+ C if include_input)
    """
    ch = c * h
    x = x_ref[...]
    xf = x.astype(jnp.float32)

    # Whole pre-activation block in one MXU matmul: e[ci*h+hi, :] = f[hi]*x[ci, :].
    # HIGHEST precision keeps the f32 product essentially exact (W is sparse
    # 0/f so each output is a single product), matching the VPU reference.
    e = jnp.dot(
        w_ref[...],
        xf,
        precision=jax.lax.Precision.HIGHEST,
        preferred_element_type=jnp.float32,
    )

    # Three large contiguous stores (only two misaligned row boundaries),
    # instead of 2*C small 6-row stores.
    o_ref[0:ch, :] = jnp.sin(e).astype(o_ref.dtype)
    o_ref[ch:2 * ch, :] = jnp.cos(e).astype(o_ref.dtype)
    if include_input:
        o_ref[2 * ch:2 * ch + c, :] = x.astype(o_ref.dtype)


def _round_up(v, m):
    return -(-v // m) * m


def _pick_tile_n(n, tile_n, target_steps=8, min_tile=512):
    """Lane tile (points axis): multiple of 128, large enough to amortize the
    ~0.35us/step overhead, small enough to give >=2 (target ~8) grid steps so
    the 'parallel' grid axis can shard across v7x's two TensorCores."""
    n_lanes = _round_up(max(int(n), 1), 128)
    tn = _round_up(-(-n_lanes // target_steps), 128)   # aim for ~target_steps
    tn = max(tn, min(min_tile, n_lanes))               # don't go too small
    tn = min(tn, _round_up(int(tile_n), 128), n_lanes) # cap at request / N
    return max(tn, 128)


def _build_weight(freqs, c):
    """(C*H, C) matrix with W[ci*h + hi, ci] = freqs[hi]."""
    h = len(freqs)
    w = np.zeros((c * h, c), dtype=np.float32)
    for ci in range(c):
        w[ci * h:(ci + 1) * h, ci] = freqs
    return w


def harmonic_embedding_transposed(x_t, frequencies, include_input=True,
                                  tile_n=8192, out_dtype=None):
    """Fused HarmonicEmbedding on the transposed (lane-dense) layout.

    x_t: (C, N) channels-first points.
    Returns (OUT_DIM, N) with rows [sin(embed) | cos(embed) | x], embed
    channel-major (row ci*H + hi = sin/cos(freqs[hi] * x[ci])).

    Preferred entry point: no wrapper-side output transpose; a downstream
    matmul can contract over the OUT_DIM rows directly.
    """
    c, n = x_t.shape
    freqs = np.asarray(jax.device_get(frequencies), dtype=np.float32).reshape(-1)
    h = int(freqs.shape[0])
    ch = c * h
    out_dim = 2 * ch + (c if include_input else 0)
    out_dtype = jnp.dtype(out_dtype) if out_dtype is not None else x_t.dtype

    w = jnp.asarray(_build_weight(freqs, c))           # (C*H, C) f32 input

    tn = _pick_tile_n(n, tile_n)
    grid = (pl.cdiv(n, tn),)                           # ragged tail clipped by Pallas

    kernel = functools.partial(
        _harmonic_kernel, c=c, h=h, include_input=include_input)

    in_bytes = n * c * jnp.dtype(x_t.dtype).itemsize
    out_bytes = n * out_dim * out_dtype.itemsize

    return pl.pallas_call(
        kernel,
        out_shape=jax.ShapeDtypeStruct((out_dim, n), out_dtype),
        grid=grid,
        in_specs=[
            pl.BlockSpec((ch, c), lambda i: (0, 0)),   # W: tiny full block each step
            pl.BlockSpec((c, tn), lambda i: (0, i)),   # lane-dense points
        ],
        out_specs=pl.BlockSpec((out_dim, tn), lambda i: (0, i)),
        compiler_params=pltpu.CompilerParams(
            dimension_semantics=("parallel",),
        ),
        cost_estimate=pl.CostEstimate(
            flops=2 * n * ch * c,
            transcendentals=2 * n * ch,
            bytes_accessed=in_bytes + out_bytes + ch * c * 4,
        ),
    )(w, x_t)


def harmonic_embedding(x, frequencies, include_input=True, tile_n=8192,
                       out_dtype=None):
    """Drop-in equivalent of the PyTorch HarmonicEmbedding.forward.

    x: (..., C).  Returns (..., 2*C*H [+ C]) channels-last, matching
    torch.cat((embed.sin(), embed.cos(), x), dim=-1).

    PERF NOTE: producing channels-last requires one XLA transpose of the
    (OUT_DIM, N) kernel output — an extra HBM read+write that dominates
    end-to-end time.  Prefer `harmonic_embedding_transposed` whenever the
    consumer can take the (OUT_DIM, N) layout directly.
    """
    *lead, c = x.shape
    n = math.prod(lead) if lead else 1
    x2d = x.reshape(n, c)
    out_t = harmonic_embedding_transposed(
        x2d.T, frequencies, include_input=include_input,
        tile_n=tile_n, out_dtype=out_dtype)
    out_dim = out_t.shape[0]
    return out_t.T.reshape(*lead, out_dim)


def make_frequencies(n_harmonic_functions=6, omega0=1.0, logspace=True):
    if logspace:
        freqs = 2.0 ** np.arange(n_harmonic_functions, dtype=np.float32)
    else:
        freqs = np.linspace(1.0, 2.0 ** (n_harmonic_functions - 1),
                            n_harmonic_functions, dtype=np.float32)
    return (omega0 * freqs).astype(np.float32)


def reference(x, frequencies, include_input=True):
    f = jnp.asarray(frequencies, dtype=x.dtype)
    embed = (x[..., None] * f).reshape(*x.shape[:-1], -1)
    parts = [jnp.sin(embed), jnp.cos(embed)]
    if include_input:
        parts.append(x)
    return jnp.concatenate(parts, axis=-1)


if __name__ == "__main__":
    # Module hyper-params (defaults of the PyTorch module).
    in_channels = 3
    n_harmonic_functions = 6
    omega0 = 1.0
    logspace = True
    include_input = True

    frequencies = make_frequencies(n_harmonic_functions, omega0, logspace)

    # Small deterministic input: (batch=2, points=64, C=3) -> 128 flattened rows.
    key = jax.random.PRNGKey(0)
    x = jax.random.normal(key, (2, 64, in_channels), dtype=jnp.float32)

    # Drop-in (channels-last) path — semantics check vs. the PyTorch formula.
    out = harmonic_embedding(x, frequencies, include_input=include_input)
    out = jax.block_until_ready(out)

    expected_dim = n_harmonic_functions * 2 * in_channels + (
        in_channels if include_input else 0)
    assert out.shape == (2, 64, expected_dim), out.shape

    ref = reference(x, frequencies, include_input=include_input)
    assert jnp.allclose(out, ref, atol=1e-5, rtol=1e-5), "mismatch vs reference"

    # Preferred fused path: (OUT_DIM, N) layout, no output transpose.
    out_t = harmonic_embedding_transposed(
        x.reshape(-1, in_channels).T, frequencies, include_input=include_input)
    out_t = jax.block_until_ready(out_t)
    assert out_t.shape == (expected_dim, 2 * 64), out_t.shape
    assert jnp.allclose(out_t, ref.reshape(-1, expected_dim).T,
                        atol=1e-5, rtol=1e-5), "transposed path mismatch"

    print("KERNEL_OK")
</pallas_src>

<mosaic_0001>
module attributes {stable_mosaic.version = 11 : i64} {
  func.func @_harmonic_kernel(%arg0: i32, %arg1: memref<18x3xf32, #tpu.memory_space<vmem>>, %arg2: memref<3x128xf32, #tpu.memory_space<vmem>>, %arg3: memref<39x128xf32, #tpu.memory_space<vmem>>) attributes {dimension_semantics = [#tpu.dimension_semantics<parallel>], iteration_bounds = array<i64: 1>, scalar_prefetch = 0 : i64, scratch_operands = 0 : i64, tpu.core_type = #tpu.core_type<tc>, window_params = [{pipeline_mode = #tpu.pipeline_mode<synchronous>, transform_indices = @transform_0, window_bounds = array<i64: 18, 3>}, {transform_indices = @transform_1, window_bounds = array<i64: 3, 128>}, {transform_indices = @transform_2, window_bounds = array<i64: 39, 128>}]} {
    %c0 = arith.constant 0 : index
    %c0_0 = arith.constant 0 : index
    %0 = vector.load %arg2[%c0, %c0_0] : memref<3x128xf32, #tpu.memory_space<vmem>>, vector<3x128xf32>
    %c0_1 = arith.constant 0 : index
    %c0_2 = arith.constant 0 : index
    %1 = vector.load %arg1[%c0_1, %c0_2] : memref<18x3xf32, #tpu.memory_space<vmem>>, vector<18x3xf32>
    %cst = arith.constant dense<0.000000e+00> : vector<18x128xf32>
    %2 = tpu.matmul %1, %0, %cst {dimension_numbers = #tpu.dot_dimension_numbers<[1], [0], [0], [1], [0, 0, 1, 1], [], []>, precision = #tpu.contract_precision<fp32>} : vector<18x3xf32>, vector<3x128xf32>, vector<18x128xf32> -> vector<18x128xf32>
    %3 = math.sin %2 : vector<18x128xf32>
    %c0_3 = arith.constant 0 : index
    %c0_4 = arith.constant 0 : index
    %4 = vector.load %arg3[%c0_3, %c0_4] : memref<39x128xf32, #tpu.memory_space<vmem>>, vector<18x128xf32>
    tpu.vector_store %arg3[%c0_3, %c0_4], %3 {strides = array<i32>} : memref<39x128xf32, #tpu.memory_space<vmem>>, vector<18x128xf32>,
    %5 = math.cos %2 : vector<18x128xf32>
    %c18 = arith.constant 18 : index
    %c0_5 = arith.constant 0 : index
    %6 = vector.load %arg3[%c18, %c0_5] : memref<39x128xf32, #tpu.memory_space<vmem>>, vector<18x128xf32>
    tpu.vector_store %arg3[%c18, %c0_5], %5 {strides = array<i32>} : memref<39x128xf32, #tpu.memory_space<vmem>>, vector<18x128xf32>,
    %c36 = arith.constant 36 : index
    %c0_6 = arith.constant 0 : index
    %7 = vector.load %arg3[%c36, %c0_6] : memref<39x128xf32, #tpu.memory_space<vmem>>, vector<3x128xf32>
    tpu.vector_store %arg3[%c36, %c0_6], %0 {strides = array<i32>} : memref<39x128xf32, #tpu.memory_space<vmem>>, vector<3x128xf32>,
    return
  }
  func.func @transform_0(%arg0: i32) -> (i32, i32) {
    %c0_i32 = arith.constant 0 : i32
    %c0_i32_0 = arith.constant 0 : i32
    %c0_i32_1 = arith.constant 0 : i32
    return %c0_i32, %c0_i32_0 : i32, i32
  }
  func.func @transform_1(%arg0: i32) -> (i32, i32) {
    %c0_i32 = arith.constant 0 : i32
    %c0_i32_0 = arith.constant 0 : i32
    return %c0_i32, %arg0 : i32, i32
  }
  func.func @transform_2(%arg0: i32) -> (i32, i32) {
    %c0_i32 = arith.constant 0 : i32
    %c0_i32_0 = arith.constant 0 : i32
    return %c0_i32, %arg0 : i32, i32
  }
}

</mosaic_0001>

<bundles_post_ra>
// kernel: tpu_custom_call.1
= control target key start
LH: loop header
LB: loop body
LE: loop exit
PB: predicated region body
PF: predicated region fallthrough
CT: control target
= control target key end

     0   :  { %vm26_vm0 = vcmask 1042432   ;;  %v1406_v2 = vmov 0.0   ;;  %vm1407_vm1 = vmmov 0   ;;  %vm16_vm2 = vcmask 23552   ;;  %s1659_s0 = inlined_call_operand.vmem [shape: f32[18,3], index: 0, kind: input, shape index: {}]   ;;  %s1660_s1 = inlined_call_operand.vmem [shape: f32[3,128], index: 1, kind: input, shape index: {}]   ;;  %s1661_s2 = inlined_call_operand.hbm [shape: f32[39,128], index: 2, kind: output, shape index: {}]  }
   0x1   :  { %v12_v0 = vld [vmem:[%s1660_s1] sm:$0x7]  ;;  %1287 = vmatprep.subr.mxu0 %v1406_v2  ;;  %1289 = vmatprep.mubr.msk.f32.mxu0 %vm1407_vm1, %v1406_v2  ;;  %v14_v4 = vld [vmem:[%s1659_s0 + $0x8] sm:$0xff]  ;;  %v15_v5 = vld [vmem:[%s1659_s0 + $0x10] sm:$0x3] }
   0x2   :  { %v13_v1 = vld [vmem:[%s1659_s0] sm:$0xff]  ;;  %v28_v3 = vsel %vm26_vm0, %v12_v0, 0  ;;  %1189 = vst [vmem:[#allocation2 + $0x24] sm:$0x7] %v12_v0  ;;  %1254 = vmatprep.subr.mxu1 %v1406_v2  ;;  %1256 = vmatprep.mubr.msk.f32.mxu1 %vm1407_vm1, %v1406_v2  ;;  %v21_v8 = vsel %vm16_vm2, %v14_v4, 0  ;;  %v24_v9 = vsel %vm16_vm2, %v15_v5, 0 }
   0x3   :  { %v31_v6 = vand.u32 4294901760, %v28_v3  ;;  %v18_v7 = vsel %vm16_vm2, %v13_v1, 0 }
   0x4   :  { %7 = vsyncpa [#allocation3], 0  ;;  %v96_v10 = vand.u32 4294901760, %v18_v7  ;;  %v106_v11 = vand.u32 4294901760, %v21_v8  ;;  %v116_v12 = vand.u32 4294901760, %v24_v9  ;;  %s1414_s0 = smov [#allocation2]  }
   0x5   :  { %v128_v13 = vsub.f32 %v28_v3, %v31_v6  ;;  %1288 = vmatpush3.msra.mxu0 %v31_v6  ;;  %1255 = vmatpush3.msra.mxu1 %v31_v6  ;;  %v1408_v63 = vmov 683565275   ;;  %v1409_v1 = vmov 2475754826   ;;  %v1410_v4 = vmov 2131351028  }
   0x6   :  { %v97_v14 = vsub.f32 %v18_v7, %v96_v10  ;;  %1265 = vmatprep.subr.mxu1 %v1406_v2  ;;  %1298 = vmatprep.subr.mxu0 %v1406_v2  ;;  %v107_v15 = vsub.f32 %v21_v8, %v106_v11  ;;  %v117_v16 = vsub.f32 %v24_v9, %v116_v12  ;;  %v1412_v8 = vmov 920167782   ;;  %s1195_s16 = sshll.u32 %s1414_s0, 4  ;;  %s1196_s16 = int_to_ptr.vmem [resolvable:$true] %s1195_s16 }
   0x7   :  { %v129_v17 = vand.u32 4294901760, %v128_v13  ;;  %s1382_s17 = scalar_lea.vmem %s1196_s16, 640  ;;  %p1387_p1 = scmp.lt.s32.totalorder %s1196_s16, %s1196_s16 }
   0x8   :  { %v98_v18 = vand.u32 4294901760, %v97_v14  ;;  %v108_v19 = vand.u32 4294901760, %v107_v15  ;;  %v118_v23 = vand.u32 4294901760, %v117_v16  ;;  %p1383_p0 = scmp.ne.s32.totalorder %s1196_s16, %s1382_s17  ;;  %p1388_p2 = scmp.lt.s32.totalorder %s1382_s17, %s1382_s17 }
   0x9   :  { %v130_v20 = vsub.f32 %v128_v13, %v129_v17 }
   0xa   :  { %1290 = vmatmul.mubr.f32.vlgmr.msra.gmra.mrb[0].mxu0 %v98_v18  ;;  %v99_v21 = vsub.f32 %v97_v14, %v98_v18  ;;  %v109_v22 = vsub.f32 %v107_v15, %v108_v19  ;;  %v119_v27 = vsub.f32 %v117_v16, %v118_v23  ;;  %p1389_p3 = por %p1388_p2, %p1387_p1 }
   0xb   :  { %1292 = vmatprep.mubr.msk.f32.mxu0 %vm1407_vm1, %v1406_v2  ;;  %v131_v24 = vand.u32 4294901760, %v130_v20  ;;  %1299 = vmatpush3.msra.mxu0 %v129_v17 }
   0xc   :  { %v100_v25 = vand.u32 4294901760, %v99_v21  ;;  %1309 = vmatprep.subr.mxu0 %v1406_v2  ;;  %v110_v26 = vand.u32 4294901760, %v109_v22  ;;  %v120_v28 = vand.u32 4294901760, %v119_v27  ;;  %p1390_p4 = pnand %p1389_p3, %p1383_p0 }
   0xe   :  { %1257 = vmatmul.mubr.f32.vlgmr.msra.gmra.mrb[0].mxu1 %v100_v25  ;;  %1293 = vmatmul.mubr.f32.gmra.mrb[2].mxu0 %v108_v19 }
   0xf   :  { %1266 = vmatpush3.msra.mxu1 %v131_v24  ;;  %1259 = vmatprep.mubr.msk.f32.mxu1 %vm1407_vm1, %v1406_v2 }
  0x10   :  { %1295 = vmatprep.mubr.msk.f32.mxu0 %vm1407_vm1, %v1406_v2  ;;  %1276 = vmatprep.subr.mxu1 %v1406_v2 }
  0x12   :  { %1260 = vmatmul.mubr.f32.gmra.mrb[2].mxu1 %v110_v26  ;;  %1296 = vmatmul.mubr.f32.gmra.mrb[4].mxu0 %v118_v23 }
  0x13   :  { %1262 = vmatprep.mubr.msk.f32.mxu1 %vm1407_vm1, %v1406_v2  ;;  %1300 = vmatprep.mubr.msk.f32.mxu0 %vm1407_vm1, %v1406_v2 }
  0x16   :  { %1263 = vmatmul.mubr.f32.gmra.mrb[4].mxu1 %v120_v28  ;;  %1301 = vmatmul.mubr.f32.vlgmr.msra.gmra.mrb[0].mxu0 %v96_v10 }
  0x17   :  { %1267 = vmatprep.mubr.msk.f32.mxu1 %vm1407_vm1, %v1406_v2  ;;  %1303 = vmatprep.mubr.msk.f32.mxu0 %vm1407_vm1, %v1406_v2 }
  0x18   :  { %1310 = vmatpush3.msra.mxu0 %v31_v6  ;;  %v1411_v6 = vmov 2102212464  }
  0x1a   :  { %1268 = vmatmul.mubr.f32.vlgmr.msra.gmra.mrb[0].mxu1 %v96_v10  ;;  %1304 = vmatmul.mubr.f32.gmra.mrb[2].mxu0 %v106_v11 }
  0x1b   :  { %1277 = vmatpush3.msra.mxu1 %v128_v13  ;;  %1270 = vmatprep.mubr.msk.f32.mxu1 %vm1407_vm1, %v1406_v2 }
  0x1c   :  { %1306 = vmatprep.mubr.msk.f32.mxu0 %vm1407_vm1, %v1406_v2 }
  0x1e   :  { %1271 = vmatmul.mubr.f32.gmra.mrb[2].mxu1 %v106_v11  ;;  %1307 = vmatmul.mubr.f32.gmra.mrb[4].mxu0 %v116_v12 }
  0x1f   :  { %1273 = vmatprep.mubr.msk.f32.mxu1 %vm1407_vm1, %v1406_v2  ;;  %1311 = vmatprep.mubr.msk.f32.mxu0 %vm1407_vm1, %v1406_v2 }
  0x22   :  { %1274 = vmatmul.mubr.f32.gmra.mrb[4].mxu1 %v116_v12  ;;  %1312 = vmatmul.mubr.f32.vlgmr.msra.gmra.mrb[0].mxu0 %v96_v10 }
  0x23   :  { %1278 = vmatprep.mubr.msk.f32.mxu1 %vm1407_vm1, %v1406_v2  ;;  %1314 = vmatprep.mubr.msk.f32.mxu0 %vm1407_vm1, %v1406_v2 }
  0x26   :  { %1279 = vmatmul.mubr.f32.vlgmr.msra.gmra.mrb[0].mxu1 %v97_v14  ;;  %1315 = vmatmul.mubr.f32.gmra.mrb[2].mxu0 %v106_v11 }
  0x27   :  { %1281 = vmatprep.mubr.msk.f32.mxu1 %vm1407_vm1, %v1406_v2  ;;  %1317 = vmatprep.mubr.msk.f32.mxu0 %vm1407_vm1, %v1406_v2 }
  0x2a   :  { %1282 = vmatmul.mubr.f32.gmra.mrb[2].mxu1 %v107_v15  ;;  %1318 = vmatmul.mubr.f32.gmra.mrb[4].mxu0 %v116_v12  ;;  %v1413_v15 = vmov 1326507024  }
  0x2b   :  { %1284 = vmatprep.mubr.msk.f32.mxu1 %vm1407_vm1, %v1406_v2 }
  0x2e   :  { %1285 = vmatmul.mubr.f32.gmra.mrb[4].mxu1 %v117_v16 }
  0xf5   :  { %v546_v29 = vpop.f32.mrb[0].mxu0 }
  0xf6   :  { %v1313_v30 = vpop.f32.mrb[1].mxu0 }
  0xf9   :  { %v284_v31 = vpop.f32.mrb[0].mxu1  ;;  %v552_v32 = vpop.f32.mrb[2].mxu0 }
  0xfa   :  { %v1486_v33 = vadd.f32 %v546_v29, %v284_v31  ;;  %v1280_v34 = vpop.f32.mrb[1].mxu1  ;;  %v1316_v35 = vpop.f32.mrb[3].mxu0 }
  0xfc   :  { %v562_v36 = vand.u32 2147483647, %v1486_v33  ;;  %v565_v37 = vand.u32 2139095040, %v1486_v33  ;;  %vm564_vm0 = vcmp.lt.s32.totalorder %v1486_v33, 0 }
  0xfd   :  { %v291_v38 = vpop.f32.mrb[2].mxu1  ;;  %v558_v39 = vpop.f32.mrb[4].mxu0 }
  0xfe   :  { %v566_v40 = vshrl.u32 %v565_v37, 23  ;;  %v1490_v41 = vadd.f32 %v552_v32, %v291_v38  ;;  %v1283_v42 = vpop.f32.mrb[3].mxu1  ;;  %v569_v43 = vand.u32 8388607, %v562_v36  ;;  %v1319_v44 = vpop.f32.mrb[5].mxu0 }
 0x100   :  { %v1206_v45 = vadd.s32 4294967169, %v566_v40  ;;  %v666_v46 = vand.u32 2147483647, %v1490_v41  ;;  %v669_v47 = vand.u32 2139095040, %v1490_v41  ;;  %v570_v50 = vor.u32 8388608, %v569_v43 }
 0x101   :  { %v298_v48 = vpop.f32.mrb[4].mxu1 }
 0x102   :  { %v572_v49 = vadd.s32 1, %v1206_v45  ;;  %v670_v51 = vshrl.u32 %v669_v47, 23  ;;  %v673_v52 = vand.u32 8388607, %v666_v46  ;;  %v1498_v53 = vadd.f32 %v558_v39, %v298_v48  ;;  %v1286_v54 = vpop.f32.mrb[5].mxu1 }
 0x103   :  { %v1500_v59 = vshll.u32 %v570_v50, 8 }
 0x104   :  { %vm573_vm3 = vcmp.gt.s32.totalorder %v572_v49, 0  ;;  %v1210_v56 = vadd.s32 4294967169, %v670_v51  ;;  %v674_v60 = vor.u32 8388608, %v673_v52  ;;  %v773_v61 = vand.u32 2139095040, %v1498_v53 }
 0x105   :  { %v574_v55 = vsel %vm573_vm3, %v572_v49, 0 }
 0x106   :  { %v575_v57 = vshrl.u32 %v574_v55, 5  ;;  %v576_v58 = vand.u32 31, %v574_v55  ;;  %v676_v3 = vadd.s32 1, %v1210_v56  ;;  %v714_v47 = vshll.u32 %v674_v60, 8 }
 0x107   :  { %v774_v48 = vshrl.u32 %v773_v61, 23 }
 0x108   :  { %v577_v62 = vsub.s32 32, %v576_v58  ;;  %v579_v0 = vshll.u32 %v1408_v63, %v576_v58  ;;  %v582_v2 = vshll.u32 %v1409_v1, %v576_v58  ;;  %v585_v5 = vshll.u32 %v1410_v4, %v576_v58 }
 0x109   :  { %v588_v7 = vshll.u32 %v1411_v6, %v576_v58  ;;  %v591_v9 = vshll.u32 %v1412_v8, %v576_v58  ;;  %vm594_vm4 = vcmp.lt.s32.totalorder %v575_v57, 1  ;;  %vm595_vm5 = vcmp.lt.s32.totalorder %v575_v57, 2 }
 0x10a   :  { %v580_v10 = vshrl.u32 %v1409_v1, %v577_v62  ;;  %v583_v11 = vshrl.u32 %v1410_v4, %v577_v62  ;;  %v586_v12 = vshrl.u32 %v1411_v6, %v577_v62  ;;  %v578_v13 = vshrl.u32 %v1408_v63, %v577_v62 }
 0x10b   :  { %v589_v14 = vshrl.u32 %v1412_v8, %v577_v62  ;;  %v592_v16 = vshrl.u32 %v1413_v15, %v577_v62  ;;  %vm596_vm6 = vcmp.lt.s32.totalorder %v575_v57, 3  ;;  %vm677_vm7 = vcmp.gt.s32.totalorder %v676_v3, 0 }
 0x10c   :  { %v581_v17 = vor.u32 %v580_v10, %v579_v0  ;;  %v584_v18 = vor.u32 %v583_v11, %v582_v2  ;;  %v587_v19 = vor.u32 %v586_v12, %v585_v5  ;;  %vm597_vm8 = vcmp.lt.s32.totalorder %v575_v57, 4 }
 0x10d   :  { %v590_v20 = vor.u32 %v589_v14, %v588_v7  ;;  %v593_v21 = vor.u32 %v592_v16, %v591_v9  ;;  %v678_v22 = vsel %vm677_vm7, %v676_v3, 0  ;;  %v1214_v14 = vadd.s32 4294967169, %v774_v48 }
 0x10e   :  { %v598_v23 = vsel %vm594_vm4, %v578_v13, %v581_v17  ;;  %v599_v24 = vsel %vm597_vm8, %v587_v19, 2102212464  ;;  %v602_v25 = vsel %vm594_vm4, %v581_v17, %v584_v18  ;;  %v606_v26 = vsel %vm594_vm4, %v584_v18, %v587_v19 }
 0x10f   :  { %v600_v27 = vsel %vm596_vm6, %v584_v18, %v599_v24  ;;  %v603_v28 = vsel %vm597_vm8, %v590_v20, 920167782  ;;  %v607_v29 = vsel %vm597_vm8, %v593_v21, 1326507024  ;;  %v679_v30 = vshrl.u32 %v678_v22, 5 }
 0x110   :  { %v601_v31 = vsel %vm595_vm5, %v598_v23, %v600_v27  ;;  %v604_v32 = vsel %vm596_vm6, %v587_v19, %v603_v28  ;;  %v608_v34 = vsel %vm596_vm6, %v590_v20, %v607_v29  ;;  %v680_v35 = vand.u32 31, %v678_v22 }
 0x111   :  { %v605_v37 = vsel %vm595_vm5, %v602_v25, %v604_v32  ;;  %v609_v38 = vsel %vm595_vm5, %v606_v26, %v608_v34  ;;  %v617_v44 = vmul.u32 %v1500_v59, %v601_v31  ;;  %vm698_vm9 = vcmp.lt.s32.totalorder %v679_v30, 1 }
 0x112   :  { %v1524_v39 = vmul.u32.u64.low %v1500_v59, %v609_v38  ;;  %v1525_v40 = vmul.u32.u64.high %v1500_v59, %v609_v38, %v1524_v39  ;;  %v1528_v42 = vmul.u32.u64.low %v1500_v59, %v605_v37  ;;  %v1529_v43 = vmul.u32.u64.high %v1500_v59, %v605_v37, %v1528_v42 }
 0x113   :  { %v681_v45 = vsub.s32 32, %v680_v35  ;;  %v683_v49 = vshll.u32 %v1408_v63, %v680_v35  ;;  %v686_v50 = vshll.u32 %v1409_v1, %v680_v35  ;;  %v689_v51 = vshll.u32 %v1410_v4, %v680_v35 }
 0x114   :  { %v692_v56 = vshll.u32 %v1411_v6, %v680_v35  ;;  %vm619_vm10 = vc.u32 %v1525_v40, %v1528_v42  ;;  %v620_v57 = vadd.s32 1, %v1529_v43  ;;  %v695_v59 = vshll.u32 %v1412_v8, %v680_v35 }
 0x115   :  { %v684_v52 = vshrl.u32 %v1409_v1, %v681_v45  ;;  %v687_v54 = vshrl.u32 %v1410_v4, %v681_v45  ;;  %v690_v55 = vshrl.u32 %v1411_v6, %v681_v45  ;;  %v693_v58 = vshrl.u32 %v1412_v8, %v681_v45 }
 0x116   :  { %v696_v0 = vshrl.u32 %v1413_v15, %v681_v45  ;;  %v621_v2 = vsel %vm619_vm10, %v620_v57, %v1529_v43  ;;  %vm700_vm11 = vcmp.lt.s32.totalorder %v679_v30, 3  ;;  %vm701_vm12 = vcmp.lt.s32.totalorder %v679_v30, 4 }
 0x117   :  { %v685_v60 = vor.u32 %v684_v52, %v683_v49  ;;  %v688_v61 = vor.u32 %v687_v54, %v686_v50  ;;  %v691_v62 = vor.u32 %v690_v55, %v689_v51  ;;  %v694_v3 = vor.u32 %v693_v58, %v692_v56 }
 0x118   :  { %v622_v5 = vadd.s32 %v621_v2, %v617_v44  ;;  %v682_v7 = vshrl.u32 %v1408_v63, %v681_v45  ;;  %v697_v9 = vor.u32 %v696_v0, %v695_v59  ;;  %vm699_vm13 = vcmp.lt.s32.totalorder %v679_v30, 2 }
 0x119   :  { %v703_v10 = vsel %vm701_vm12, %v691_v62, 2102212464  ;;  %v706_v11 = vsel %vm698_vm9, %v685_v60, %v688_v61  ;;  %v707_v12 = vsel %vm701_vm12, %v694_v3, 920167782  ;;  %v710_v13 = vsel %vm698_vm9, %v688_v61, %v691_v62 }
 0x11a   :  { %v623_v16 = vadd.s32 536870912, %v622_v5  ;;  %v708_v17 = vsel %vm700_vm11, %v691_v62, %v707_v12  ;;  %v711_v18 = vsel %vm701_vm12, %v697_v9, 1326507024  ;;  %v702_v19 = vsel %vm698_vm9, %v682_v7, %v685_v60 }
 0x11b   :  { %v704_v20 = vsel %vm700_vm11, %v688_v61, %v703_v10  ;;  %v709_v21 = vsel %vm699_vm13, %v706_v11, %v708_v17  ;;  %v712_v22 = vsel %vm700_vm11, %v694_v3, %v711_v18  ;;  %v770_v29 = vand.u32 2147483647, %v1498_v53 }
 0x11c   :  { %v624_v23 = vshrl.u32 %v623_v16, 30  ;;  %v713_v24 = vsel %vm699_vm13, %v710_v13, %v712_v22  ;;  %v1554_v25 = vmul.u32.u64.low %v714_v47, %v709_v21  ;;  %v1555_v26 = vmul.u32.u64.high %v714_v47, %v709_v21, %v1554_v25 }
 0x11d   :  { %v1557_v27 = vmul.u32.u64.low %v714_v47, %v713_v24  ;;  %v1558_v28 = vmul.u32.u64.high %v714_v47, %v713_v24, %v1557_v27  ;;  %v780_v31 = vadd.s32 1, %v1214_v14  ;;  %v705_v34 = vsel %vm699_vm13, %v702_v19, %v704_v20 }
 0x11e   :  { %v625_v32 = vshll.u32 %v624_v23, 30  ;;  %v724_v37 = vadd.s32 1, %v1555_v26  ;;  %v721_v30 = vmul.u32 %v714_v47, %v705_v34  ;;  %v777_v39 = vand.u32 8388607, %v770_v29 }
 0x11f   :  { %vm781_vm14 = vcmp.gt.s32.totalorder %v780_v31, 0  ;;  %vm723_vm15 = vc.u32 %v1558_v28, %v1554_v25  ;;  %v618_v56 = vadd.s32 %v1528_v42, %v1525_v40  ;;  %v648_v60 = vsub.s32 4, %v624_v23 }
 0x120   :  { %v626_v35 = vsub.s32 %v622_v5, %v625_v32  ;;  %v782_v38 = vsel %vm781_vm14, %v780_v31, 0  ;;  %v725_v44 = vsel %vm723_vm15, %v724_v37, %v1555_v26  ;;  %v778_v51 = vor.u32 8388608, %v777_v39 }
 0x121   :  { %v726_v45 = vadd.s32 %v725_v44, %v721_v30  ;;  %v784_v48 = vand.u32 31, %v782_v38  ;;  %v1575_v61 = vshrl.u32 %v782_v38, 5  ;;  %v649_v26 = vsel %vm564_vm0, %v648_v60, %v624_v23 }
 0x122   :  { %v628_v43 = vsub.s32 0, %v626_v35  ;;  %v1573_v59 = vshll.u32 %v778_v51, 8  ;;  %vm563_vm7 = vcmp.le.f32.partialorder %v562_v36, 0.7853982  ;;  %vm668_vm9 = vcmp.lt.s32.totalorder %v1490_v41, 0 }
 0x123   :  { %v727_v50 = vadd.s32 536870912, %v726_v45  ;;  %v785_v52 = vsub.s32 32, %v784_v48  ;;  %v787_v62 = vshll.u32 %v1408_v63, %v784_v48  ;;  %v790_v42 = vshll.u32 %v1409_v1, %v784_v48 }
 0x124   :  { %v1207_v49 = vmin.u32 %v628_v43, %v626_v35  ;;  %v793_v12 = vshll.u32 %v1410_v4, %v784_v48  ;;  %v796_v13 = vshll.u32 %v1411_v6, %v784_v48  ;;  %v799_v22 = vshll.u32 %v1412_v8, %v784_v48 }
 0x125   :  { %v1566_v55 = vshrl.u32 %v727_v50, 30  ;;  %v788_v58 = vshrl.u32 %v1409_v1, %v785_v52  ;;  %v791_v3 = vshrl.u32 %v1410_v4, %v785_v52  ;;  %v797_v5 = vshrl.u32 %v1412_v8, %v785_v52 }
 0x126   :  { %v630_v54 = vclz %v1207_v49  ;;  %v794_v9 = vshrl.u32 %v1411_v6, %v785_v52  ;;  %v800_v18 = vshrl.u32 %v1413_v15, %v785_v52  ;;  %v722_v4 = vadd.s32 %v1554_v25, %v1558_v28 }
 0x127   :  { %v729_v57 = vshll.u32 %v1566_v55, 30  ;;  %v789_v11 = vor.u32 %v788_v58, %v787_v62  ;;  %v792_v20 = vor.u32 %v791_v3, %v790_v42  ;;  %v798_v21 = vor.u32 %v797_v5, %v796_v13 }
 0x128   :  { %v1208_v47 = vadd.s32 4294967294, %v630_v54  ;;  %v795_v27 = vor.u32 %v794_v9, %v793_v12  ;;  %v801_v6 = vor.u32 %v800_v18, %v799_v22  ;;  %vm802_vm2 = vcmp.lt.s32.totalorder %v1575_v61, 1 }
 0x129   :  { %v730_v2 = vsub.s32 %v726_v45, %v729_v57  ;;  %v786_v15 = vshrl.u32 %v1408_v63, %v785_v52  ;;  %vm804_vm3 = vcmp.lt.s32.totalorder %v1575_v61, 3  ;;  %vm805_vm4 = vcmp.lt.s32.totalorder %v1575_v61, 4 }
 0x12a   :  { %vm1209_vm1 = vcmp.lt.s32.totalorder %v1208_v47, 0  ;;  %v811_v37 = vsel %vm805_vm4, %v798_v21, 920167782  ;;  %v807_v23 = vsel %vm805_vm4, %v795_v27, 2102212464  ;;  %v814_v28 = vsel %vm802_vm2, %v792_v20, %v795_v27 }
 0x12b   :  { %v633_v0 = vsel %vm1209_vm1, 0, %v1208_v47  ;;  %v732_v10 = vsub.s32 0, %v730_v2  ;;  %v812_v25 = vsel %vm804_vm3, %v795_v27, %v811_v37  ;;  %vm803_vm6 = vcmp.lt.s32.totalorder %v1575_v61, 2 }
 0x12c   :  { %v634_v7 = vsub.s32 32, %v633_v0  ;;  %v638_v40 = vsub.s32 4294967266, %v633_v0  ;;  %v635_v14 = vshll.u32 %v626_v35, %v633_v0  ;;  %v810_v35 = vsel %vm802_vm2, %v789_v11, %v792_v20 }
 0x12d   :  { %v1211_v19 = vmin.u32 %v732_v10, %v730_v2  ;;  %v806_v30 = vsel %vm802_vm2, %v786_v15, %v789_v11  ;;  %v815_v39 = vsel %vm805_vm4, %v801_v6, 1326507024  ;;  %v813_v44 = vsel %vm803_vm6, %v810_v35, %v812_v25 }
 0x12e   :  { %v636_v16 = vshrl.u32 %v618_v56, %v634_v7  ;;  %v639_v17 = vadd.s32 127, %v638_v40  ;;  %v816_v45 = vsel %vm804_vm3, %v798_v21, %v815_v39  ;;  %v808_v50 = vsel %vm804_vm3, %v792_v20, %v807_v23 }
 0x12f   :  { %v734_v31 = vclz %v1211_v19  ;;  %v817_v51 = vsel %vm803_vm6, %v814_v28, %v816_v45  ;;  %v1609_v60 = vmul.u32.u64.low %v1573_v59, %v813_v44  ;;  %v1610_v62 = vmul.u32.u64.high %v1573_v59, %v813_v44, %v1609_v60 }
 0x130   :  { %v637_v24 = vor.u32 %v636_v16, %v635_v14  ;;  %v640_v1 = vshll.u32 %v639_v17, 23  ;;  %v1605_v47 = vmul.u32.u64.low %v1573_v59, %v817_v51  ;;  %v1606_v56 = vmul.u32.u64.high %v1573_v59, %v817_v51, %v1605_v47 }
 0x131   :  { %v1212_v34 = vadd.s32 4294967294, %v734_v31  ;;  %v809_v7 = vsel %vm803_vm6, %v806_v30, %v808_v50  ;;  %v651_v40 = vsel %vm563_vm7, 0, %v649_v26  ;;  %v828_v9 = vadd.s32 1, %v1610_v62 }
 0x132   :  { %v641_v32 = vor.u32 4788187, %v640_v1  ;;  %v644_v8 = vcvt.s32.f32 %v637_v24  ;;  %vm827_vm8 = vc.u32 %v1606_v56, %v1609_v60  ;;  %v825_v36 = vmul.u32 %v1573_v59, %v809_v7 }
 0x133   :  { %vm1213_vm5 = vcmp.lt.s32.totalorder %v1212_v34, 0  ;;  %v655_v10 = vadd.s32 3, %v651_v40  ;;  %v829_v13 = vsel %vm827_vm8, %v828_v9, %v1610_v62  ;;  %v752_v61 = vsub.s32 4, %v1566_v55 }
 0x134   :  { %v642_v38 = vand.u32 2147483647, %v641_v32  ;;  %v737_v43 = vsel %vm1213_vm5, 0, %v1212_v34  ;;  %v830_v14 = vadd.s32 %v829_v13, %v825_v36  ;;  %v970_v17 = vand.u32 3, %v651_v40 }
 0x135   :  { %v738_v48 = vsub.s32 32, %v737_v43  ;;  %v742_v49 = vsub.s32 4294967266, %v737_v43  ;;  %v739_v54 = vshll.u32 %v730_v2, %v737_v43  ;;  %v656_v19 = vand.u32 3, %v655_v10 }
 0x136   :  { %v645_v63 = vmul.f32 %v644_v8, %v642_v38  ;;  %v831_v18 = vadd.s32 536870912, %v830_v14  ;;  %vm667_vm10 = vcmp.le.f32.partialorder %v666_v46, 0.7853982  ;;  %v753_v22 = vsel %vm668_vm9, %v752_v61, %v1566_v55 }
 0x137   :  { %v740_v57 = vshrl.u32 %v722_v4, %v738_v48  ;;  %v743_v58 = vadd.s32 127, %v742_v49  ;;  %vm971_vm11 = vcmp.lt.s32.totalorder %v970_v17, 2  ;;  %vm661_vm12 = vcmp.eq.s32.totalorder %v656_v19, 2 }
 0x138   :  { %v646_v52 = vxor.u32 2147483648, %v645_v63  ;;  %v1627_v21 = vshrl.u32 %v831_v18, 30  ;;  %vm975_vm13 = vcmp.eq.s32.totalorder %v970_v17, 2  ;;  %v755_v6 = vsel %vm667_vm10, 0, %v753_v22 }
 0x139   :  { %v741_v2 = vor.u32 %v740_v57, %v739_v54  ;;  %v744_v5 = vshll.u32 %v743_v58, 23  ;;  %vm658_vm14 = vcmp.eq.s32.totalorder %v656_v19, 0  ;;  %vm972_vm15 = vcmp.eq.s32.totalorder %v970_v17, 0 }
 0x13a   :  { %v647_v0 = vsel %vm564_vm0, %v646_v52, %v645_v63  ;;  %v833_v26 = vshll.u32 %v1627_v21, 30  ;;  %vm657_vm0 = vcmp.lt.s32.totalorder %v656_v19, 2  ;;  %vm654_vm1 = vweird.f32 %v1486_v33 }
 0x13b   :  { %v650_v3 = vsel %vm563_vm7, %v1486_v33, %v647_v0  ;;  %v745_v42 = vor.u32 4788187, %v744_v5  ;;  %v748_v12 = vcvt.s32.f32 %v741_v2  ;;  %v759_v38 = vadd.s32 3, %v755_v6 }
 0x13c   :  { %1370 = vcosq.f32 %v650_v3  ;;  %v834_v32 = vsub.s32 %v830_v14, %v833_v26  ;;  %v1073_v30 = vand.u32 3, %v755_v6  ;;  %v826_v52 = vadd.s32 %v1609_v60, %v1606_v56 }
 0x13d   :  { %1372 = vsinq.f32 %v650_v3  ;;  %v746_v11 = vand.u32 2147483647, %v745_v42  ;;  %v760_v63 = vand.u32 3, %v759_v38 }
 0x13e   :  { %v836_v34 = vsub.s32 0, %v834_v32  ;;  %vm1074_vm2 = vcmp.lt.s32.totalorder %v1073_v30, 2  ;;  %vm1075_vm3 = vcmp.eq.s32.totalorder %v1073_v30, 0  ;;  %vm1078_vm4 = vcmp.eq.s32.totalorder %v1073_v30, 2 }
 0x13f   :  { %v749_v16 = vmul.f32 %v748_v12, %v746_v11  ;;  %vm762_vm6 = vcmp.eq.s32.totalorder %v760_v63, 0  ;;  %vm765_vm7 = vcmp.eq.s32.totalorder %v760_v63, 2  ;;  %vm761_vm8 = vcmp.lt.s32.totalorder %v760_v63, 2 }
 0x140   :  { %v1215_v28 = vmin.u32 %v836_v34, %v834_v32  ;;  %v856_v11 = vsub.s32 4, %v1627_v21 }
 0x141   :  { %v750_v20 = vxor.u32 2147483648, %v749_v16 }
 0x142   :  { %v838_v39 = vclz %v1215_v28 }
 0x143   :  { %v751_v59 = vsel %vm668_vm9, %v750_v20, %v749_v16  ;;  %vm758_vm9 = vweird.f32 %v1490_v41 }
 0x144   :  { %v754_v1 = vsel %vm667_vm10, %v1490_v41, %v751_v59  ;;  %v1216_v43 = vadd.s32 4294967294, %v838_v39  ;;  %vm772_vm10 = vcmp.lt.s32.totalorder %v1498_v53, 0 }
 0x145   :  { %1374 = vcosq.f32 %v754_v1  ;;  %v857_v13 = vsel %vm772_vm10, %v856_v11, %v1627_v21 }
 0x146   :  { %v1371_v24 = vpop.eup %1370  ;;  %1376 = vsinq.f32 %v754_v1  ;;  %vm1217_vm5 = vcmp.lt.s32.totalorder %v1216_v43, 0 }
 0x147   :  { %v1373_v27 = vpop.eup %1372  ;;  %v662_v4 = vxor.u32 2147483648, %v1371_v24  ;;  %v841_v49 = vsel %vm1217_vm5, 0, %v1216_v43 }
 0x148   :  { %v659_v31 = vxor.u32 2147483648, %v1373_v27  ;;  %v842_v54 = vsub.s32 32, %v841_v49  ;;  %v846_v58 = vsub.s32 4294967266, %v841_v49  ;;  %v843_v7 = vshll.u32 %v834_v32, %v841_v49 }
 0x149   :  { %v663_v46 = vsel %vm661_vm12, %v662_v4, %v1373_v27  ;;  %v977_v15 = vsel %vm975_vm13, %v662_v4, %v1373_v27 }
 0x14a   :  { %v660_v55 = vsel %vm658_vm14, %v1371_v24, %v659_v31  ;;  %v974_v8 = vsel %vm972_vm15, %v1371_v24, %v659_v31  ;;  %v844_v3 = vshrl.u32 %v826_v52, %v842_v54  ;;  %v847_v40 = vadd.s32 127, %v846_v58 }
 0x14b   :  { %v664_v35 = vsel %vm657_vm0, %v660_v55, %v663_v46  ;;  %v978_v37 = vsel %vm971_vm11, %v974_v8, %v977_v15  ;;  %vm771_vm11 = vcmp.le.f32.partialorder %v770_v29, 0.7853982 }
 0x14c   :  { %v665_v23 = vsel %vm654_vm1, nan, %v664_v35  ;;  %v979_v25 = vsel %vm654_vm1, nan, %v978_v37  ;;  %v845_v42 = vor.u32 %v844_v3, %v843_v7  ;;  %v848_v9 = vshll.u32 %v847_v40, 23 }
 0x14d   :  { %874 = vst [vmem:[#allocation2] sm:$0xff] %v665_v23  ;;  %1186 = vst [vmem:[#allocation2 + $0x12] sm:$0xff] %v979_v25  ;;  %v859_v16 = vsel %vm771_vm11, 0, %v857_v13 }
 0x14e   :  { %v849_v56 = vor.u32 4788187, %v848_v9  ;;  %v852_v36 = vcvt.s32.f32 %v845_v42  ;;  %v863_v61 = vadd.s32 3, %v859_v16  ;;  %v1176_v18 = vand.u32 3, %v859_v16 }
 0x14f   :  { %v1375_v44 = vpop.eup %1374 }
 0x150   :  { %v1377_v45 = vpop.eup %1376  ;;  %v766_v48 = vxor.u32 2147483648, %v1375_v44  ;;  %v850_v60 = vand.u32 2147483647, %v849_v56  ;;  %v864_v17 = vand.u32 3, %v863_v61  ;;  %vm1181_vm13 = vcmp.eq.s32.totalorder %v1176_v18, 2 }
 0x151   :  { %v763_v33 = vxor.u32 2147483648, %v1377_v45  ;;  %vm1178_vm15 = vcmp.eq.s32.totalorder %v1176_v18, 0  ;;  %vm1177_vm1 = vcmp.lt.s32.totalorder %v1176_v18, 2 }
 0x152   :  { %v767_v50 = vsel %vm765_vm7, %v766_v48, %v1377_v45  ;;  %v1080_v51 = vsel %vm1078_vm4, %v766_v48, %v1377_v45  ;;  %v853_v10 = vmul.f32 %v852_v36, %v850_v60  ;;  %vm869_vm12 = vcmp.eq.s32.totalorder %v864_v17, 2 }
 0x153   :  { %v764_v47 = vsel %vm762_vm6, %v1375_v44, %v763_v33  ;;  %v1077_v57 = vsel %vm1075_vm3, %v1375_v44, %v763_v33  ;;  %vm866_vm14 = vcmp.eq.s32.totalorder %v864_v17, 0  ;;  %vm865_vm0 = vcmp.lt.s32.totalorder %v864_v17, 2 }
 0x154   :  { %v768_v62 = vsel %vm761_vm8, %v764_v47, %v767_v50  ;;  %v1081_v0 = vsel %vm1074_vm2, %v1077_v57, %v1080_v51  ;;  %v854_v12 = vxor.u32 2147483648, %v853_v10  ;;  %vm862_vm2 = vweird.f32 %v1498_v53 }
 0x155   :  { %v769_v2 = vsel %vm758_vm9, nan, %v768_v62  ;;  %v1082_v5 = vsel %vm758_vm9, nan, %v1081_v0 }
 0x156   :  { %875 = vst [vmem:[#allocation2 + $0x8] sm:$0xff] %v769_v2  ;;  %1187 = vst [vmem:[#allocation2 + $0x1a] sm:$0xff] %v1082_v5  ;;  %v855_v41 = vsel %vm772_vm10, %v854_v12, %v853_v10 }
 0x157   :  { %v858_v14 = vsel %vm771_vm11, %v1498_v53, %v855_v41 }
 0x158   :  { %1378 = vcosq.f32 %v858_v14 }
 0x159   :  { %1380 = vsinq.f32 %v858_v14 }
 0x162   :  { %v1379_v19 = vpop.eup %1378 }
 0x163   :  { %v1381_v20 = vpop.eup %1380  ;;  %v870_v59 = vxor.u32 2147483648, %v1379_v19 }
 0x164   :  { %v867_v22 = vxor.u32 2147483648, %v1381_v20 }
 0x165   :  { %v871_v29 = vsel %vm869_vm12, %v870_v59, %v1381_v20  ;;  %v1183_v21 = vsel %vm1181_vm13, %v870_v59, %v1381_v20 }
 0x166   :  { %v868_v24 = vsel %vm866_vm14, %v1379_v19, %v867_v22  ;;  %v1180_v1 = vsel %vm1178_vm15, %v1379_v19, %v867_v22 }
 0x167   :  { %v872_v26 = vsel %vm865_vm0, %v868_v24, %v871_v29  ;;  %v1184_v27 = vsel %vm1177_vm1, %v1180_v1, %v1183_v21 }
 0x168   :  { %v873_v4 = vsel %vm862_vm2, nan, %v872_v26  ;;  %v1185_v31 = vsel %vm862_vm2, nan, %v1184_v27 }
 0x169   :  { %876 = vst [vmem:[#allocation2 + $0x10] sm:$0x3] %v873_v4  ;;  %1188 = vst [vmem:[#allocation2 + $0x22] sm:$0x3] %v1185_v31 }
 0x16a   :  { %1393 = shalt.err (!%p1390_p4)
}
 0x16b   :  { %s1394_s20 = scalar_lea.hbm %s1661_s2, 640 }
 0x16c   :  { %p1395_p5 = scmp.ne.s32.totalorder %s1661_s2, %s1394_s20  ;;  %p1398_p6 = scmp.lt.u32.totalorder %s1394_s20, %s1661_s2 }
 0x16e   :  { %p1400_p7 = pnand %p1398_p6, %p1395_p5 }
 0x170   :  { %1403 = shalt.err (!%p1400_p7)
}
 0x171   :  { %s1415_s25 = smov 128   ;;  %s1416_s26 = smov 8  }
 0x172   :  { %1201 = dma.vmem_to_hbm [thread:$0]  %s1196_s16, 640, %s1661_s2, [#allocation3], %s1415_s25, %s1415_s25, %s1416_s26  }
 0x173   :  { %1404 = dma.done.wait [#allocation3], 640  }
 0x174   :  { %1405 = vsyncadd [#allocation3], 4294966656 }
 0x175   :  { %1205 = vsyncpa [#allocation3], 1 }

</bundles_post_ra>
